<compile_context>
chip_gen: v6e
topology: v6e:2x2x1
jax: 0.10.0
libtpu: 0.0.40
codegen_flags: <defaults>
</compile_context>

<pallas_src>
import jax
import jax.numpy as jnp
from jax.experimental import pallas as pl
from jax.experimental.pallas import tpu as pltpu

_EPS = 1e-5


def _layernorm_kernel(x_ref, w_ref, o_ref):
    # x_ref: (tile_rows, D) block, w_ref: (1, D) block, o_ref: (tile_rows, D)
    x = x_ref[...].astype(jnp.float32)
    w = w_ref[...].astype(jnp.float32)
    # Single pass over the tile: E[x] and E[x^2]; clamp variance for safety.
    mean = jnp.mean(x, axis=-1, keepdims=True)
    mean_sq = jnp.mean(x * x, axis=-1, keepdims=True)
    var = jnp.maximum(mean_sq - mean * mean, 0.0)
    rstd = jax.lax.rsqrt(var + _EPS)          # EUP slot -> essentially free
    o_ref[...] = (((x - mean) * rstd) * w).astype(o_ref.dtype)


def _vmem_budgets():
    """(working-set target, scoped vmem limit) in bytes, per TPU generation."""
    cap = 128 << 20  # v5e/v6e default if the query is unavailable
    try:
        info = pltpu.get_tpu_info()
        cap = int(getattr(info, "vmem_capacity_bytes", cap) or cap)
    except Exception:
        pass
    limit = min(cap * 3 // 4, 96 << 20)   # scoped limit with physical headroom
    work = min(cap * 2 // 5, 48 << 20)    # blocks + in-kernel f32 temps target
    return work, limit


def _pick_tile_rows(rows, d, in_bytes, out_bytes, work_budget):
    """Row tile (multiple of 8) sized for VMEM, HBM-roofline blocks, and a
    grid of >= ~8 (preferably even) steps."""
    rows8 = ((rows + 7) // 8) * 8
    # Per tile-row: double-buffered input + output blocks, plus ~3 live f32
    # full-tile temporaries inside the kernel body.
    per_row = 2 * d * (in_bytes + out_bytes) + 3 * d * 4
    tile = work_budget // max(per_row, 1)
    # Cap the raw input block at ~4 MiB (already ~85% of HBM roofline).
    tile = min(tile, (4 << 20) // max(d * in_bytes, 1))
    # Keep >= ~8 grid steps when the data is big enough (pipeline overlap,
    # and the parallel row axis can shard across both v7x TensorCores).
    min_steps = 8
    steps_cap = ((rows8 + min_steps - 1) // min_steps + 7) // 8 * 8
    tile = min(tile, max(8, steps_cap), rows8)
    tile = max(8, (int(tile) // 8) * 8)
    # Prefer an even number of grid steps (balanced split across 2 TCs).
    steps = (rows + tile - 1) // tile
    if steps > 1 and steps % 2 == 1:
        cand = max(8, ((rows + steps) // (steps + 1) + 7) // 8 * 8)
        if ((rows + cand - 1) // cand) % 2 == 0:
            tile = cand
    return tile


def layer_norm_pallas(x, weight, *, tile_rows=None, out_dtype=jnp.float32):
    """x: (B, S, D) any float dtype; weight: (D,). Returns out_dtype (B, S, D).

    out_dtype defaults to float32 (matches the module's .float() contract);
    pass jnp.bfloat16 when the consumer downcasts anyway to halve write traffic.
    """
    B, S, D = x.shape
    rows = B * S
    x2 = x.reshape(rows, D)
    w2 = weight.reshape(1, D)

    in_bytes = jnp.dtype(x.dtype).itemsize
    out_bytes = jnp.dtype(out_dtype).itemsize
    work_budget, vmem_limit = _vmem_budgets()

    if tile_rows is None:
        tile_rows = _pick_tile_rows(rows, D, in_bytes, out_bytes, work_budget)

    # cdiv grid: the partial tail block is clipped by Pallas (reads past `rows`
    # are garbage but rows are independent; OOB stores are masked) -> no
    # pad/slice passes over HBM.
    num_steps = pl.cdiv(rows, tile_rows)
    grid = (num_steps,)

    x_index_map = lambda i: (i, 0)
    x_spec = pl.BlockSpec((tile_rows, D), x_index_map)
    in_block_bytes = tile_rows * D * in_bytes
    if in_block_bytes < (2 << 20) and num_steps >= 4:
        # Small blocks expose DMA latency -> 3-deep input pipeline.
        try:
            x_spec = pl.BlockSpec((tile_rows, D), x_index_map,
                                  pipeline_mode=pl.Buffered(3))
        except TypeError:
            x_spec = pl.BlockSpec((tile_rows, D), x_index_map)

    out = pl.pallas_call(
        _layernorm_kernel,
        out_shape=jax.ShapeDtypeStruct((rows, D), out_dtype),
        grid_spec=pltpu.PrefetchScalarGridSpec(
            num_scalar_prefetch=0,
            grid=grid,
            in_specs=[
                x_spec,
                pl.BlockSpec((1, D), lambda i: (0, 0)),
            ],
            out_specs=pl.BlockSpec((tile_rows, D), lambda i: (i, 0)),
        ),
        compiler_params=pltpu.CompilerParams(
            dimension_semantics=("parallel",),
            vmem_limit_bytes=vmem_limit,
        ),
    )(x2, w2)

    return out.reshape(B, S, D)


def layer_norm_ref(x, weight):
    x = x.astype(jnp.float32)
    mean = jnp.mean(x, axis=-1, keepdims=True)
    var = jnp.mean((x - mean) ** 2, axis=-1, keepdims=True)
    xn = (x - mean) * jax.lax.rsqrt(var + _EPS)
    return xn * weight[None, None, :].astype(jnp.float32)


if __name__ == "__main__":
    key = jax.random.PRNGKey(0)

    # Primary test: shapes consistent with the module (B, S, D), D = normalized dim.
    B, S, D = 2, 8, 32
    x = jax.random.normal(key, (B, S, D), dtype=jnp.float32)
    weight = jnp.ones((D,), dtype=jnp.float32)   # module init: ones([dim])

    out = layer_norm_pallas(x, weight)
    jax.block_until_ready(out)
    ref = layer_norm_ref(x, weight)
    assert out.shape == (B, S, D) and out.dtype == jnp.float32
    assert jnp.allclose(out, ref, atol=1e-5, rtol=1e-5)

    # Tail test: rows not a multiple of the tile -> clipped partial block path.
    B2, S2 = 3, 5
    x2 = jax.random.normal(jax.random.PRNGKey(0), (B2, S2, D), dtype=jnp.float32)
    out2 = layer_norm_pallas(x2, weight, tile_rows=8)
    jax.block_until_ready(out2)
    ref2 = layer_norm_ref(x2, weight)
    assert out2.shape == (B2, S2, D) and out2.dtype == jnp.float32
    assert jnp.allclose(out2, ref2, atol=1e-5, rtol=1e-5)

    # Multi-step grid test: >= 8 even steps, small blocks -> Buffered(3) input path.
    B3, S3 = 4, 16
    x3 = jax.random.normal(jax.random.PRNGKey(1), (B3, S3, D), dtype=jnp.float32)
    out3 = layer_norm_pallas(x3, weight)
    jax.block_until_ready(out3)
    ref3 = layer_norm_ref(x3, weight)
    assert jnp.allclose(out3, ref3, atol=1e-5, rtol=1e-5)

    # bf16-in / bf16-out opt-in path (lane-dense D, halved write traffic).
    D4 = 256
    x4 = jax.random.normal(jax.random.PRNGKey(2), (2, 8, D4)).astype(jnp.bfloat16)
    w4 = jnp.ones((D4,), dtype=jnp.float32)
    out4 = layer_norm_pallas(x4, w4, out_dtype=jnp.bfloat16)
    jax.block_until_ready(out4)
    ref4 = layer_norm_ref(x4, w4)
    assert out4.dtype == jnp.bfloat16
    assert jnp.allclose(out4.astype(jnp.float32), ref4, atol=3e-2, rtol=3e-2)

    print("KERNEL_OK")
</pallas_src>

<mosaic_0001>
module attributes {stable_mosaic.version = 11 : i64} {
  func.func @_layernorm_kernel(%arg0: i32, %arg1: memref<8x32xf32, #tpu.memory_space<vmem>>, %arg2: memref<1x32xf32, #tpu.memory_space<vmem>>, %arg3: memref<8x32xf32, #tpu.memory_space<vmem>>) attributes {dimension_semantics = [#tpu.dimension_semantics<parallel>], iteration_bounds = array<i64: 2>, scalar_prefetch = 0 : i64, scratch_operands = 0 : i64, tpu.core_type = #tpu.core_type<tc>, window_params = [{transform_indices = @transform_0, window_bounds = array<i64: 8, 32>}, {pipeline_mode = #tpu.pipeline_mode<synchronous>, transform_indices = @transform_1, window_bounds = array<i64: 1, 32>}, {transform_indices = @transform_2, window_bounds = array<i64: 8, 32>}]} {
    %c0 = arith.constant 0 : index
    %c0_0 = arith.constant 0 : index
    %0 = vector.load %arg1[%c0, %c0_0] : memref<8x32xf32, #tpu.memory_space<vmem>>, vector<8x32xf32>
    %c0_1 = arith.constant 0 : index
    %c0_2 = arith.constant 0 : index
    %1 = vector.load %arg2[%c0_1, %c0_2] : memref<1x32xf32, #tpu.memory_space<vmem>>, vector<1x32xf32>
    %cst = arith.constant dense<0.000000e+00> : vector<8xf32>
    %2 = vector.multi_reduction <add>, %0, %cst [1] : vector<8x32xf32> to vector<8xf32>
    %3 = vector.shape_cast %2 : vector<8xf32> to vector<8x1xf32>
    %cst_3 = arith.constant 3.200000e+01 : f32
    %4 = vector.broadcast %cst_3 : f32 to vector<8x1xf32>
    %5 = arith.divf %3, %4 : vector<8x1xf32>
    %6 = arith.mulf %0, %0 : vector<8x32xf32>
    %cst_4 = arith.constant dense<0.000000e+00> : vector<8xf32>
    %7 = vector.multi_reduction <add>, %6, %cst_4 [1] : vector<8x32xf32> to vector<8xf32>
    %8 = vector.shape_cast %7 : vector<8xf32> to vector<8x1xf32>
    %cst_5 = arith.constant 3.200000e+01 : f32
    %9 = vector.broadcast %cst_5 : f32 to vector<8x1xf32>
    %10 = arith.divf %8, %9 : vector<8x1xf32>
    %11 = arith.mulf %5, %5 : vector<8x1xf32>
    %12 = arith.subf %10, %11 : vector<8x1xf32>
    %cst_6 = arith.constant 0.000000e+00 : f32
    %13 = vector.broadcast %cst_6 : f32 to vector<8x1xf32>
    %14 = arith.maximumf %12, %13 : vector<8x1xf32>
    %cst_7 = arith.constant 9.99999974E-6 : f32
    %15 = vector.broadcast %cst_7 : f32 to vector<8x1xf32>
    %16 = arith.addf %14, %15 : vector<8x1xf32>
    %17 = math.rsqrt %16 : vector<8x1xf32>
    %18 = vector.broadcast %5 : vector<8x1xf32> to vector<8x32xf32>
    %19 = arith.subf %0, %18 : vector<8x32xf32>
    %20 = vector.broadcast %17 : vector<8x1xf32> to vector<8x32xf32>
    %21 = arith.mulf %19, %20 : vector<8x32xf32>
    %22 = vector.broadcast %1 : vector<1x32xf32> to vector<8x32xf32>
    %23 = arith.mulf %21, %22 : vector<8x32xf32>
    %c0_8 = arith.constant 0 : index
    %c0_9 = arith.constant 0 : index
    %24 = vector.load %arg3[%c0_8, %c0_9] : memref<8x32xf32, #tpu.memory_space<vmem>>, vector<8x32xf32>
    tpu.vector_store %arg3[%c0_8, %c0_9], %23 {strides = array<i32>} : memref<8x32xf32, #tpu.memory_space<vmem>>, vector<8x32xf32>,
    return
  }
  func.func @transform_0(%arg0: i32) -> (i32, i32) {
    %c0_i32 = arith.constant 0 : i32
    %c0_i32_0 = arith.constant 0 : i32
    return %arg0, %c0_i32 : i32, i32
  }
  func.func @transform_1(%arg0: i32) -> (i32, i32) {
    %c0_i32 = arith.constant 0 : i32
    %c0_i32_0 = arith.constant 0 : i32
    %c0_i32_1 = arith.constant 0 : i32
    return %c0_i32, %c0_i32_0 : i32, i32
  }
  func.func @transform_2(%arg0: i32) -> (i32, i32) {
    %c0_i32 = arith.constant 0 : i32
    %c0_i32_0 = arith.constant 0 : i32
    return %arg0, %c0_i32 : i32, i32
  }
}

</mosaic_0001>

<bundles_post_ra>
// kernel: tpu_custom_call.1
= control target key start
LH: loop header
LB: loop body
LE: loop exit
PB: predicated region body
PF: predicated region fallthrough
CT: control target
= control target key end

     0   :  { %7 = vsyncpa [#allocation3], 0  ;;  %s590_s0 = inlined_call_operand.hbm [shape: f32[16,32], index: 0, kind: input, shape index: {}]   ;;  %s591_s1 = inlined_call_operand.vmem [shape: f32[1,32], index: 1, kind: input, shape index: {}]   ;;  %s592_s2 = inlined_call_operand.hbm [shape: f32[16,32], index: 2, kind: output, shape index: {}]  }
   0x1   :  { %9 = vsyncpa [#allocation3 + $0x1], 0 }
   0x2   :  { %10 = vsyncpa [#allocation4], 0 }
   0x3   :  { %12 = vsyncpa [#allocation4 + $0x1], 0  ;;  %s443_s9 = smov 0   ;;  %s445_s10 = smov 0  }
   0x4   :  { %s447_s11 = smov 0   ;;  %s449_s12 = smov 0  }
   0x5 LB: > { %s464_s13 = sadd.s32 4294967295, %s424_s12   ;;  %s271_s14 = sadd.s32 4294967294, %s424_s12   ;;  %s424_s12 = sphi %s449_s12, %s609_s12   ;;  %s420_s11 = sphi %s447_s11, %s608_s11   ;;  %s416_s10 = sphi %s445_s10, %s607_s10   ;;  %s412_s9 = sphi %s443_s9, %s606_s9  }
   0x6   : > { %s468_s15 = sadd.s32 1, %s424_s12   ;;  %s25_s16 = sadd.s32 1, %s420_s11 }
   0x7   : > { %s22_s17 = ssub.s32 %s424_s12, %s468_s15  ;;  %p32_p0 = scmp.ne.s32.totalorder %s420_s11, %s416_s10 }
   0x8   : > { %p23_p1 = scmp.eq.s32.totalorder %s22_s17, 0  ;;  %p33_p2 = scmp.eq.s32.totalorder %s424_s12, 0 }
   0x9   : > { %p38_p3 = scmp.ne.s32.totalorder %s416_s10, %s412_s9  ;;  %p39_p4 = scmp.eq.s32.totalorder %s464_s13, 0 }
   0xa   : > { %s480_s18 = scalar_select %p23_p1, %s420_s11, %s25_s16  }
   0xb   : > { %p482_p5 = por %p33_p2, %p32_p0  ;;  %p486_p6 = por %p39_p4, %p38_p3 }
   0xc   : > { %p83_p7 = scmp.eq.s32.totalorder %s464_s13, 1  ;;  %p89_p8 = scmp.eq.s32.totalorder %s271_s14, 1 }
   0xd   : > { %s596_s20 = scalar_select %p486_p6, 1, 0 }
   0xe   : > { %p296_p10 = scmp.lt.s32.totalorder %s424_s12, 2  ;;  %p493_p11 = por %p83_p7, %p32_p0 }
   0xf   : > { %p497_p12 = por %p89_p8, %p38_p3  ;;  %s112_s23 = sand.u32 1, %s420_s11  }
  0x10   : > { %s597_s21 = scalar_select %p493_p11, 1, 0 }
  0x11   : > { %s598_s22 = scalar_select %p497_p12, 1, 0 }
  0x12   : > { %s275_s24 = sshll.u32 %s424_s12, 7  ;;  %s274_s25 = sshll.u32 %s112_s23, 3 }
  0x13   : > { %s506_s28 = scalar_lea.hbm %s590_s0, %s275_s24  ;;  %s116_s29 = scalar_lea.vmem [#allocation2], %s274_s25 }
  0x14   : > { %s123_s30 = sshll.u32 %s116_s29, 4  ;;  %p510_p13 = pnand %p296_p10, %p482_p5  ;;  %s514_s30 = int_to_ptr.vmem [resolvable:$true] %s123_s30 }
  0x15   : > { %s113_s4 = scalar_lea.sflag [#allocation3], %s112_s23  ;;  %s332_s5 = scalar_lea.hbm %s506_s28, 128 }
  0x16   : > { %p333_p2 = scmp.ne.s32.totalorder %s506_s28, %s332_s5  ;;  %p334_p3 = pneg %p510_p13 }
  0x17   : > { %s337_s8 = scalar_lea.hbm %s590_s0, 256  ;;  %p338_p5 = scmp.lt.s32.totalorder %s506_s28, %s590_s0 }
  0x18   : > { %p335_p4 = pnand %p334_p3, %p333_p2  ;;  %p339_p8 = scmp.lt.s32.totalorder %s337_s8, %s332_s5 }
  0x1a   : > { %p336_p7 = pneg %p335_p4  ;;  %p340_p10 = por %p339_p8, %p338_p5 }
  0x1c   : > { %p341_p9 = pnand %p340_p10, %p336_p7 }
  0x1e   : > { %344 = shalt.err (!%p341_p9)
}
  0x1f   : > { %s345_s17 = scalar_lea.vmem %s514_s30, 128  ;;  %s426_s19 = smov [#allocation2]  }
  0x20   : > { %p346_p0 = scmp.ne.s32.totalorder %s514_s30, %s345_s17  ;;  %s350_s23 = sshll.u32 %s426_s19, 4  ;;  %s351_s23 = int_to_ptr.vmem [resolvable:$false] %s350_s23 }
  0x21   : > { %s352_s24 = scalar_lea.vmem %s351_s23, 256  ;;  %p353_p4 = scmp.lt.s32.totalorder %s514_s30, %s351_s23 }
  0x22   : > { %p348_p1 = pnand %p346_p0, %p334_p3  ;;  %p354_p12 = scmp.lt.s32.totalorder %s352_s24, %s345_s17 }
  0x24   : > { %p349_p2 = pneg %p348_p1  ;;  %p355_p11 = por %p354_p12, %p353_p4 }
  0x26   : > { %p356_p6 = pnand %p355_p11, %p349_p2 }
  0x28   : > { %359 = shalt.err (!%p356_p6)
}
  0x29   : > { %291 = dma.hbm_to_vmem [thread:$0]  (!%p510_p13), %s506_s28, 128, %s514_s30, %s113_s4  }
  0x2a   : > { %p600_p9 = scmp.lt.s32.totalorder %s424_s12, 3  ;;  %p601_p7 = scmp.ge.s32.totalorder %s424_s12, 1 }
  0x2c   : > { %p129_p0 = pnand %p601_p7, %p600_p9 }
  0x2d   : > { %s541_s25 = sand.u32 (!%p129_p0), 1, %s416_s10   ;;  %p602_p6 = scmp.ne.s32.totalorder (!%p129_p0), %s596_s20, 0 }
  0x2e   : > { %132 = sbr.rel (%p129_p0) target bundleno = 235 (0xeb), region = 28  ;;  %s277_s26 = sshll.u32 (!%p129_p0), %s541_s25, 3 }
  0x2f   : > { %s135_s27 = scalar_lea.sflag (!%p129_p0), [#allocation3], %s541_s25  ;;  %s138_s29 = scalar_lea.vmem (!%p129_p0), [#allocation2], %s277_s26 }
  0x33   : > { %403 = dma.done.wait (%p602_p6), %s135_s27, 128  }
  0x34   : > { %405 = vsyncadd (%p602_p6), %s135_s27, 4294967168  ;;  %vm161_vm0 = vcmask 261120   ;;  %v159_v0 = vld [vmem:[%s138_s29] sm:$0xff]  ;;  %s281_s30 = sshll.u32 %s464_s13, 7  ;;  %s158_s3 = scalar_lea.vmem [#allocation5], %s277_s26 }
  0x35   : > { %v162_v1 = vsel %vm161_vm0, %v159_v0, 0.0  ;;  %v167_v2 = vmul.f32 %v159_v0, %v159_v0  ;;  %v279_v14 = vld [vmem:[%s591_s1] ss:$0 sm:$0xff]  ;;  %s201_s4 = sshll.u32 %s158_s3, 4  ;;  %s199_s7 = scalar_lea.hbm %s592_s2, %s281_s30  ;;  %s202_s4 = int_to_ptr.vmem [resolvable:$true] %s201_s4 }
  0x36   : > { %163 = vadd.xlane.f32.xlu0 %v162_v1  ;;  %s188_s8 = scalar_lea.sflag [#allocation4], %s541_s25  ;;  %s360_s14 = scalar_lea.vmem %s202_s4, 128 }
  0x37   : > { %v168_v3 = vsel %vm161_vm0, %v167_v2, 0.0  ;;  %p361_p11 = scmp.ne.s32.totalorder %s202_s4, %s360_s14  ;;  %p603_p12 = scmp.ne.s32.totalorder %s597_s21, 0 }
  0x38   : > { %s427_s16 = smov [#allocation5]  }
  0x39   : > { %p362_p13 = pnand %p361_p11, %p603_p12  ;;  %s364_s17 = sshll.u32 %s427_s16, 4  ;;  %s365_s17 = int_to_ptr.vmem [resolvable:$false] %s364_s17 }
  0x3a   : > { %169 = vadd.xlane.f32.xlu0 %v168_v3  ;;  %s366_s13 = scalar_lea.vmem %s365_s17, 256  ;;  %p367_p3 = scmp.lt.s32.totalorder %s202_s4, %s365_s17 }
  0x3b   : > { %p363_p1 = pneg %p362_p13  ;;  %p368_p5 = scmp.lt.s32.totalorder %s366_s13, %s360_s14 }
  0x3d   : > { %p369_p8 = por %p368_p5, %p367_p3 }
  0x3f   : > { %p370_p10 = pnand %p369_p8, %p363_p1 }
  0xbf   : > { %v164_v4 = vpop.xlane.xlu0 %163 }
  0xc0   : > { %v166_v5 = vmul.f32 0.03125, %v164_v4 }
  0xc2   : > { %v172_v7 = vmul.f32 %v166_v5, %v166_v5  ;;  %v177_v12 = vsub.f32 %v159_v0, %v166_v5 }
  0xc3   : > { %v170_v6 = vpop.xlane.xlu0 %169 }
  0xc4   : > { %v171_v8 = vmul.f32 0.03125, %v170_v6 }
  0xc6   : > { %v173_v9 = vsub.f32 %v171_v8, %v172_v7 }
  0xc8   : > { %v174_v10 = vmax.f32 %v173_v9, 0.0 }
  0xca   : > { %v175_v11 = vadd.f32 1e-05, %v174_v10 }
  0xcc   : > { %330 = vrsqrt.f32 %v175_v11 }
  0xd9   : > { %v331_v13 = vpop.eup %330 }
  0xda   : > { %v178_v15 = vmul.f32 %v331_v13, %v177_v12 }
  0xdc   : > { %v185_v16 = vmul.f32 %v279_v14, %v178_v15 }
  0xde   : > { %186 = vst.msk [vmem:[%s158_s3] sm:$0xff] %vm161_vm0, %v185_v16 }
  0xdf   : > { %373 = shalt.err (!%p370_p10)
}
  0xe0   : > { %s374_s19 = scalar_lea.hbm %s199_s7, 128  ;;  %s378_s25 = scalar_lea.hbm %s592_s2, 256 }
  0xe1   : > { %p375_p2 = scmp.ne.s32.totalorder %s199_s7, %s374_s19  ;;  %p379_p7 = scmp.lt.s32.totalorder %s199_s7, %s592_s2 }
  0xe2   : > { %p380_p0 = scmp.lt.s32.totalorder %s378_s25, %s374_s19 }
  0xe3   : > { %p376_p4 = pnand %p375_p2, %p603_p12 }
  0xe4   : > { %p381_p6 = por %p380_p0, %p379_p7 }
  0xe5   : > { %p377_p9 = pneg %p376_p4 }
  0xe7   : > { %p382_p11 = pnand %p381_p6, %p377_p9 }
  0xe9   : > { %385 = shalt.err (!%p382_p11)
}
  0xea   : > { %286 = dma.vmem_to_hbm [thread:$0]  (%p603_p12), %s202_s4, 128, %s199_s7, %s188_s8  }
  0xeb PF: > { %s213_s29 = sand.u32 1, %s412_s9   ;;  %p604_p13 = scmp.ne.s32.totalorder %s598_s22, 0 }
  0xec   : > { %p605_p1 = scmp.ge.s32.totalorder %s424_s12, 2  ;;  %s214_s20 = scalar_lea.sflag [#allocation4], %s213_s29 }
  0xee   : > { %p293_p3 = pnand %p605_p1, %p604_p13 }
  0xf0   : > { %p294_p5 = pneg %p293_p3 }
  0xf2   : > { %407 = dma.done.wait (%p294_p5), %s214_s20, 128  }
  0xf3   : > { %409 = vsyncadd (%p294_p5), %s214_s20, 4294967168  ;;  %p15_p8 = scmp.ge.s32.totalorder %s468_s15, 4   ;;  %s606_s9 = smov %s416_s10 }
  0xf4   : > { %s607_s10 = smov %s420_s11  ;;  %s608_s11 = smov %s480_s18 }
  0xf5   : > { %s609_s12 = smov %s468_s15  ;;  %17 = sbr.rel (!%p15_p8) target bundleno = 5 (0x5), region = 73 }
  0xfa   :  { %219 = vsyncpa [#allocation3], 1 }
  0xfb   :  { %221 = vsyncpa [#allocation3 + $0x1], 1 }
  0xfc   :  { %222 = vsyncpa [#allocation4], 1 }
  0xfd   :  { %224 = vsyncpa [#allocation4 + $0x1], 1 }

</bundles_post_ra>
